<compile_context>
chip_gen: v7x
topology: tpu7x:2x2x1
jax: 0.10.0
libtpu: 0.0.40
codegen_flags: <defaults>
</compile_context>

<pallas_src>
import functools
import math

import numpy as np
import jax
import jax.numpy as jnp
from jax import lax
from jax.experimental import pallas as pl
from jax.experimental.pallas import tpu as pltpu


def _round_up(x, m):
    return ((x + m - 1) // m) * m


# --------------------------------------------------------------------------------------
# Stage 1: k/v embedding + image-validity flag, packed bf16 [k | v | valid | zeros]
# lane-padded to kv_w (multiple of 128): unmasked full-width stores, and the stage-2
# resident kvv block is exactly (8,128)-tile aligned.
# --------------------------------------------------------------------------------------
def _kv_embed_kernel(img_ref, wk_ref, bk_ref, wv_ref, bv_ref, kvv_ref, *, hidden, kv_w):
    f32 = jnp.float32
    bf16 = jnp.bfloat16
    tm = img_ref.shape[0]
    img = img_ref[...]                                                  # (TM, C_img) f32
    img_bf = img.astype(bf16)
    k = jnp.dot(img_bf, wk_ref[...], preferred_element_type=f32) + bk_ref[...]   # (TM, H)
    v = jnp.dot(img_bf, wv_ref[...], preferred_element_type=f32) + bv_ref[...]   # (TM, H)
    # invalid point <=> sum over image channels == 0 (matches the PyTorch reference)
    valid = (jnp.sum(img, axis=1, keepdims=True) != 0.0).astype(f32)    # (TM, 1)
    parts = [k, v, valid]
    pad = kv_w - (2 * hidden + 1)
    if pad:
        parts.append(jnp.zeros((tm, pad), f32))
    kvv_ref[...] = jnp.concatenate(parts, axis=1).astype(bf16)


# --------------------------------------------------------------------------------------
# Stage 2: fused kNN + cross attention + output projection for one (batch, row-tile)
# grid point.  Columns are restricted to the query's own batch segment.
# --------------------------------------------------------------------------------------
def _fusion_kernel(lidar_ref, pts_ref, geo_ref, kvv_ref,
                   wq_ref, bq_ref, wpt_ref, bp_ref, out_ref,
                   *, n_neighbors, hidden):
    f32 = jnp.float32
    bf16 = jnp.bfloat16
    H = hidden
    K = n_neighbors
    tm = lidar_ref.shape[0]
    n_cols = kvv_ref.shape[0]
    neg_inf = jnp.float32(-jnp.inf)
    big = f32(1e29)
    inv_sqrt = f32(1.0 / math.sqrt(H))

    # ---- q embedding for this row tile (tiny MXU matmul, bf16 weights) ----
    q = jnp.dot(lidar_ref[...].astype(bf16), wq_ref[...],
                preferred_element_type=f32) + bq_ref[...]               # (TM, H) f32

    # ---- distance proxy |p_m|^2 - 2 p_q . p_m (per-query const dropped), VPU only ----
    pts = pts_ref[...]                                                  # (TM, 3) f32
    geo = geo_ref[...]                                                  # (4, S)  f32
    dist = (geo[3:4, :]
            - 2.0 * pts[:, 0:1] * geo[0:1, :]
            - 2.0 * pts[:, 1:2] * geo[1:2, :]
            - 2.0 * pts[:, 2:3] * geo[2:3, :])                          # (TM, S) f32
    # pad columns carry |p|^2 = 1e30 -> dist ~ 1e30 -> never the argmin of real points

    col_ids = lax.broadcasted_iota(jnp.int32, (1, n_cols), 1)           # (1, S) row
    kvv = kvv_ref[...]                                                  # (S, kv_w) bf16

    # ---- top-K with online softmax (running m, l, acc; no K live tiles) ----
    m_run = jnp.full((tm, 1), neg_inf, f32)
    l_run = jnp.zeros((tm, 1), f32)
    acc = jnp.zeros((tm, H), f32)

    for _ in range(K):
        mval = jnp.min(dist, axis=-1, keepdims=True)                     # (TM, 1)
        idx = jnp.min(jnp.where(dist <= mval, col_ids, n_cols),
                      axis=-1, keepdims=True)                            # (TM, 1) int32
        oh = col_ids == idx                                              # (TM, S) bool

        # gather this neighbor's [k | v | valid] with ONE bf16 MXU matmul
        g = jnp.dot(oh.astype(bf16), kvv, preferred_element_type=f32)    # (TM, kv_w)
        kg = g[:, :H]
        vg = g[:, H:2 * H]
        valid_j = g[:, 2 * H:2 * H + 1]

        s_j = jnp.sum(q * kg, axis=-1, keepdims=True) * inv_sqrt         # (TM, 1)
        # -inf if neighbor has no valid image features, or if it was a pad pick
        # (only possible when the batch segment has fewer than K real points).
        ok = jnp.logical_and(valid_j > 0.5, mval < big)
        s_j = jnp.where(ok, s_j, neg_inf)

        # online softmax update (safe when everything so far is -inf)
        m_new = jnp.maximum(m_run, s_j)
        m_safe = jnp.where(m_new == neg_inf, f32(0.0), m_new)
        alpha = jnp.exp(m_run - m_safe)
        e_j = jnp.exp(s_j - m_safe)
        l_run = alpha * l_run + e_j
        acc = alpha * acc + e_j * vg
        m_run = m_new

        dist = jnp.where(oh, f32(2e30), dist)      # exclude chosen neighbor next round

    # rows whose neighbors are all invalid -> l_run == 0 -> output 0
    # (mirrors softmax + nan_to_num in the reference)
    inv_l = pl.reciprocal(l_run, approx=True)
    out_h = jnp.where(l_run > 0.0, acc * inv_l, 0.0)                      # (TM, H)
    # TODO(synk): attn_dropout(p=0.3) is identity in eval mode; train-time dropout not applied.

    # ---- lane-dense transposed projection: (C_img, TM) = wp^T @ out_h^T + bp ----
    dn_nt = (((1,), (1,)), ((), ()))
    out_t = lax.dot_general(wpt_ref[...], out_h.astype(bf16), dn_nt,
                            preferred_element_type=f32) + bp_ref[...]
    out_ref[...] = out_t.astype(out_ref.dtype)


# --------------------------------------------------------------------------------------
# Wrapper
# --------------------------------------------------------------------------------------
def _vmem_capacity_bytes():
    try:
        info = pltpu.get_tpu_info()
        cap = getattr(info, "vmem_capacity_bytes", None)
        if cap:
            return int(cap)
    except Exception:
        pass
    return 64 * 1024 * 1024   # conservative (v7x-sized) default


def _plan_tiling(max_seg_len, n_batches, kv_w, vmem_cap):
    """Pick row tile TM and per-segment padded length S_pad from an explicit byte budget."""
    budget = min((vmem_cap * 3) // 4, 96 << 20)
    s0 = _round_up(max(int(max_seg_len), 128), 128)
    tm = 128                                           # output lane constraint: TM % 128 == 0
    for cand in (256, 128):
        if s0 % cand:
            continue                                   # don't inflate segment padding for TM
        resident = 2 * s0 * (kv_w * 2 + 8 * 4)         # kvv bf16 + geo f32 (8-sublane pad), x2 buffers
        temps = 8 * cand * s0 * 4                      # dist / masks / one-hot / gather headroom
        if resident + temps <= budget:
            tm = cand
            break
    s_pad = _round_up(s0, tm)
    if n_batches * (s_pad // tm) < 2:                  # keep both v7x TensorCores busy
        s_pad = 2 * tm
    return tm, s_pad, budget


def deep_fusion_forward(points, point_id_offset, lidar_features, image_features,
                        params, n_neighbors):
    # NOTE: point_id_offset (cumulative segment offsets) is consumed as concrete values
    # for the wrapper-side segment padding; the wrapper is eager (do not jit it whole).
    n = points.shape[0]
    c_img = image_features.shape[1]
    c_lidar = lidar_features.shape[1]
    hidden = params["wq"].shape[1]
    kv_w = _round_up(2 * hidden + 1, 128)
    f32 = jnp.float32
    bf16 = jnp.bfloat16

    offs = np.asarray(point_id_offset, dtype=np.int64).reshape(-1)
    starts = np.concatenate([np.zeros((1,), np.int64), offs[:-1]])
    lens = offs - starts
    n_batches = int(offs.shape[0])
    assert int(offs[-1]) == n, "point_id_offset must be cumulative offsets summing to N"

    vmem_cap = _vmem_capacity_bytes()
    tm, s_pad, vmem_limit = _plan_tiling(int(lens.max()), n_batches, kv_w, vmem_cap)
    tps = s_pad // tm                    # row tiles per segment
    n_tot = n_batches * s_pad

    # ---- wrapper-side layout plumbing: each segment gets its own padded slab ----
    gidx = np.full((n_tot,), n, dtype=np.int32)       # n -> appended zero row (pad)
    inv_idx = np.zeros((n,), np.int32)
    for b in range(n_batches):
        lb, sb = int(lens[b]), int(starts[b])
        gidx[b * s_pad: b * s_pad + lb] = np.arange(sb, sb + lb, dtype=np.int32)
        inv_idx[sb: sb + lb] = np.arange(b * s_pad, b * s_pad + lb, dtype=np.int32)
    gidx = jnp.asarray(gidx)
    real = (gidx < n).reshape(1, n_tot)

    def pad_rows(x):
        x = x.astype(f32)
        x = jnp.concatenate([x, jnp.zeros((1, x.shape[1]), f32)], axis=0)
        return jnp.take(x, gidx, axis=0)

    pts_pad = pad_rows(points)                          # (N_tot, 3)
    lidar_pad = pad_rows(lidar_features)                # (N_tot, C_lidar)
    image_pad = pad_rows(image_features)                # (N_tot, C_img)  (pads are all-zero -> invalid)

    # (4, N_tot) geometry slab [x; y; z; |p|^2]; pad columns get |p|^2 = 1e30
    p2 = jnp.sum(pts_pad * pts_pad, axis=1).reshape(1, n_tot)
    p2 = jnp.where(real, p2, f32(1e30))
    geo = jnp.concatenate([pts_pad.T, p2], axis=0)      # (4, N_tot) f32

    # pre-cast MXU weights to bf16 once
    wk_bf = params["wk"].astype(bf16)
    wv_bf = params["wv"].astype(bf16)
    wq_bf = params["wq"].astype(bf16)
    wpt_bf = params["wp"].T.astype(bf16)                # (C_img, H)
    bk = params["bk"].astype(f32)
    bv = params["bv"].astype(f32)
    bq = params["bq"].astype(f32)
    bp_col = params["bp"].reshape(c_img, 1).astype(f32)

    cparams1 = pltpu.CompilerParams(dimension_semantics=("parallel",),
                                    vmem_limit_bytes=vmem_limit)
    cparams2 = pltpu.CompilerParams(dimension_semantics=("parallel", "parallel"),
                                    vmem_limit_bytes=vmem_limit)

    # ---- stage 1: k / v embedding + validity, packed bf16, lane-padded to kv_w ----
    kvv = pl.pallas_call(
        functools.partial(_kv_embed_kernel, hidden=hidden, kv_w=kv_w),
        out_shape=jax.ShapeDtypeStruct((n_tot, kv_w), bf16),
        grid=(n_tot // tm,),
        in_specs=[
            pl.BlockSpec((tm, c_img), lambda i: (i, 0)),
            pl.BlockSpec((c_img, hidden), lambda i: (0, 0)),
            pl.BlockSpec((1, hidden), lambda i: (0, 0)),
            pl.BlockSpec((c_img, hidden), lambda i: (0, 0)),
            pl.BlockSpec((1, hidden), lambda i: (0, 0)),
        ],
        out_specs=pl.BlockSpec((tm, kv_w), lambda i: (i, 0)),
        compiler_params=cparams1,
    )(image_pad, wk_bf, bk, wv_bf, bv)

    # ---- stage 2: segment-restricted kNN + attention + projection, lane-dense output ----
    out_t = pl.pallas_call(
        functools.partial(_fusion_kernel, n_neighbors=n_neighbors, hidden=hidden),
        out_shape=jax.ShapeDtypeStruct((c_img, n_tot), f32),
        grid=(n_batches, tps),
        in_specs=[
            pl.BlockSpec((tm, c_lidar), lambda b, t: (b * tps + t, 0)),   # lidar row tile
            pl.BlockSpec((tm, 3), lambda b, t: (b * tps + t, 0)),         # query points tile
            pl.BlockSpec((4, s_pad), lambda b, t: (0, b)),                # segment geometry slab
            pl.BlockSpec((s_pad, kv_w), lambda b, t: (b, 0)),             # segment [k|v|valid]
            pl.BlockSpec((c_lidar, hidden), lambda b, t: (0, 0)),         # wq (bf16)
            pl.BlockSpec((1, hidden), lambda b, t: (0, 0)),               # bq
            pl.BlockSpec((c_img, hidden), lambda b, t: (0, 0)),           # wp^T (bf16)
            pl.BlockSpec((c_img, 1), lambda b, t: (0, 0)),                # bp (column)
        ],
        out_specs=pl.BlockSpec((c_img, tm), lambda b, t: (0, b * tps + t)),
        compiler_params=cparams2,
    )(lidar_pad, pts_pad, geo, kvv, wq_bf, bq, wpt_bf, bp_col)

    # back to (N, C_img) in the original point order
    return jnp.take(out_t.T, jnp.asarray(inv_idx), axis=0)


def init_params(key, lidar_channel, image_channel, hidden_channel):
    # nn.Linear default init: U(-1/sqrt(fan_in), 1/sqrt(fan_in)) for W and b
    def linear(k, fan_in, fan_out):
        kw, kb = jax.random.split(k)
        bound = 1.0 / math.sqrt(fan_in)
        w = jax.random.uniform(kw, (fan_in, fan_out), jnp.float32, -bound, bound)
        b = jax.random.uniform(kb, (1, fan_out), jnp.float32, -bound, bound)
        return w, b

    kq, kk, kv, kp = jax.random.split(key, 4)
    wq, bq = linear(kq, lidar_channel, hidden_channel)
    wk, bk = linear(kk, image_channel, hidden_channel)
    wv, bv = linear(kv, image_channel, hidden_channel)
    wp, bp = linear(kp, hidden_channel, image_channel)
    return dict(wq=wq, bq=bq, wk=wk, bk=bk, wv=wv, bv=bv, wp=wp, bp=bp)


if __name__ == "__main__":
    lidar_channel, image_channel, hidden_channel, n_neighbors = 8, 16, 32, 4
    n_per_batch, n_batches = 128, 2
    n = n_per_batch * n_batches

    key = jax.random.PRNGKey(0)
    k_pts, k_lidar, k_img, k_params = jax.random.split(key, 4)

    points = jax.random.normal(k_pts, (n, 3), jnp.float32) * 5.0
    lidar_features = jax.random.normal(k_lidar, (n, lidar_channel), jnp.float32)
    image_features = jax.random.normal(k_img, (n, image_channel), jnp.float32)
    # a few points with no valid image features (exercises the -inf / nan_to_num path)
    image_features = image_features.at[5].set(0.0)
    image_features = image_features.at[200].set(0.0)

    point_id_offset = jnp.array([n_per_batch, n], dtype=jnp.int32)  # cumulative offsets

    params = init_params(k_params, lidar_channel, image_channel, hidden_channel)

    out = deep_fusion_forward(points, point_id_offset, lidar_features,
                              image_features, params, n_neighbors)
    out = jax.block_until_ready(out)
    assert out.shape == (n, image_channel)
    assert bool(jnp.all(jnp.isfinite(out)))
    print("KERNEL_OK")
</pallas_src>

<mosaic_0001>
module attributes {stable_mosaic.version = 11 : i64} {
  func.func @_kv_embed_kernel(%arg0: i32, %arg1: memref<128x16xf32, #tpu.memory_space<vmem>>, %arg2: memref<16x32xbf16, #tpu.memory_space<vmem>>, %arg3: memref<1x32xf32, #tpu.memory_space<vmem>>, %arg4: memref<16x32xbf16, #tpu.memory_space<vmem>>, %arg5: memref<1x32xf32, #tpu.memory_space<vmem>>, %arg6: memref<128x128xbf16, #tpu.memory_space<vmem>>) attributes {dimension_semantics = [#tpu.dimension_semantics<parallel>], iteration_bounds = array<i64: 2>, scalar_prefetch = 0 : i64, scratch_operands = 0 : i64, tpu.core_type = #tpu.core_type<tc>, window_params = [{transform_indices = @transform_0, window_bounds = array<i64: 128, 16>}, {pipeline_mode = #tpu.pipeline_mode<synchronous>, transform_indices = @transform_1, window_bounds = array<i64: 16, 32>}, {pipeline_mode = #tpu.pipeline_mode<synchronous>, transform_indices = @transform_2, window_bounds = array<i64: 1, 32>}, {pipeline_mode = #tpu.pipeline_mode<synchronous>, transform_indices = @transform_3, window_bounds = array<i64: 16, 32>}, {pipeline_mode = #tpu.pipeline_mode<synchronous>, transform_indices = @transform_4, window_bounds = array<i64: 1, 32>}, {transform_indices = @transform_5, window_bounds = array<i64: 128, 128>}]} {
    %c0 = arith.constant 0 : index
    %c0_0 = arith.constant 0 : index
    %0 = vector.load %arg1[%c0, %c0_0] : memref<128x16xf32, #tpu.memory_space<vmem>>, vector<128x16xf32>
    %1 = arith.truncf %0 : vector<128x16xf32> to vector<128x16xbf16>
    %c0_1 = arith.constant 0 : index
    %c0_2 = arith.constant 0 : index
    %2 = vector.load %arg2[%c0_1, %c0_2] : memref<16x32xbf16, #tpu.memory_space<vmem>>, vector<16x32xbf16>
    %cst = arith.constant dense<0.000000e+00> : vector<128x32xf32>
    %3 = tpu.matmul %1, %2, %cst {dimension_numbers = #tpu.dot_dimension_numbers<[1], [0], [0], [1], [0, 0, 1, 1], [], []>} : vector<128x16xbf16>, vector<16x32xbf16>, vector<128x32xf32> -> vector<128x32xf32>
    %c0_3 = arith.constant 0 : index
    %c0_4 = arith.constant 0 : index
    %4 = vector.load %arg3[%c0_3, %c0_4] : memref<1x32xf32, #tpu.memory_space<vmem>>, vector<1x32xf32>
    %5 = vector.broadcast %4 : vector<1x32xf32> to vector<128x32xf32>
    %6 = arith.addf %3, %5 : vector<128x32xf32>
    %c0_5 = arith.constant 0 : index
    %c0_6 = arith.constant 0 : index
    %7 = vector.load %arg4[%c0_5, %c0_6] : memref<16x32xbf16, #tpu.memory_space<vmem>>, vector<16x32xbf16>
    %cst_7 = arith.constant dense<0.000000e+00> : vector<128x32xf32>
    %8 = tpu.matmul %1, %7, %cst_7 {dimension_numbers = #tpu.dot_dimension_numbers<[1], [0], [0], [1], [0, 0, 1, 1], [], []>} : vector<128x16xbf16>, vector<16x32xbf16>, vector<128x32xf32> -> vector<128x32xf32>
    %c0_8 = arith.constant 0 : index
    %c0_9 = arith.constant 0 : index
    %9 = vector.load %arg5[%c0_8, %c0_9] : memref<1x32xf32, #tpu.memory_space<vmem>>, vector<1x32xf32>
    %10 = vector.broadcast %9 : vector<1x32xf32> to vector<128x32xf32>
    %11 = arith.addf %8, %10 : vector<128x32xf32>
    %cst_10 = arith.constant dense<0.000000e+00> : vector<128xf32>
    %12 = vector.multi_reduction <add>, %0, %cst_10 [1] : vector<128x16xf32> to vector<128xf32>
    %13 = vector.shape_cast %12 : vector<128xf32> to vector<128x1xf32>
    %cst_11 = arith.constant 0.000000e+00 : f32
    %14 = vector.broadcast %cst_11 : f32 to vector<128x1xf32>
    %15 = arith.cmpf one, %13, %14 : vector<128x1xf32>
    %16 = arith.extui %15 : vector<128x1xi1> to vector<128x1xi32>
    %17 = arith.sitofp %16 : vector<128x1xi32> to vector<128x1xf32>
    %cst_12 = arith.constant 0.000000e+00 : f32
    %18 = vector.broadcast %cst_12 : f32 to vector<128x63xf32>
    %19 = tpu.concatenate %6, %11, %17, %18 in 1 : vector<128x32xf32>, vector<128x32xf32>, vector<128x1xf32>, vector<128x63xf32> -> vector<128x128xf32>
    %20 = arith.truncf %19 : vector<128x128xf32> to vector<128x128xbf16>
    %c0_13 = arith.constant 0 : index
    %c0_14 = arith.constant 0 : index
    %21 = vector.load %arg6[%c0_13, %c0_14] : memref<128x128xbf16, #tpu.memory_space<vmem>>, vector<128x128xbf16>
    tpu.vector_store %arg6[%c0_13, %c0_14], %20 {strides = array<i32>} : memref<128x128xbf16, #tpu.memory_space<vmem>>, vector<128x128xbf16>,
    return
  }
  func.func @transform_0(%arg0: i32) -> (i32, i32) {
    %c0_i32 = arith.constant 0 : i32
    %c0_i32_0 = arith.constant 0 : i32
    return %arg0, %c0_i32 : i32, i32
  }
  func.func @transform_1(%arg0: i32) -> (i32, i32) {
    %c0_i32 = arith.constant 0 : i32
    %c0_i32_0 = arith.constant 0 : i32
    %c0_i32_1 = arith.constant 0 : i32
    return %c0_i32, %c0_i32_0 : i32, i32
  }
  func.func @transform_2(%arg0: i32) -> (i32, i32) {
    %c0_i32 = arith.constant 0 : i32
    %c0_i32_0 = arith.constant 0 : i32
    %c0_i32_1 = arith.constant 0 : i32
    return %c0_i32, %c0_i32_0 : i32, i32
  }
  func.func @transform_3(%arg0: i32) -> (i32, i32) {
    %c0_i32 = arith.constant 0 : i32
    %c0_i32_0 = arith.constant 0 : i32
    %c0_i32_1 = arith.constant 0 : i32
    return %c0_i32, %c0_i32_0 : i32, i32
  }
  func.func @transform_4(%arg0: i32) -> (i32, i32) {
    %c0_i32 = arith.constant 0 : i32
    %c0_i32_0 = arith.constant 0 : i32
    %c0_i32_1 = arith.constant 0 : i32
    return %c0_i32, %c0_i32_0 : i32, i32
  }
  func.func @transform_5(%arg0: i32) -> (i32, i32) {
    %c0_i32 = arith.constant 0 : i32
    %c0_i32_0 = arith.constant 0 : i32
    return %arg0, %c0_i32 : i32, i32
  }
}

</mosaic_0001>

<bundles_post_ra>
// kernel: tpu_custom_call.1
= control target key start
LH: loop header
LB: loop body
LE: loop exit
PB: predicated region body
PF: predicated region fallthrough
CT: control target
= control target key end

     0   :  { %10 = vsyncpa [#allocation3], 0  ;;  %s1588_s0 = inlined_call_operand.vmem [shape: f32[256,16], index: 0, kind: input, shape index: {}]   ;;  %s1589_s1 = inlined_call_operand.vmem [shape: bf16[16,32], index: 1, kind: input, shape index: {}]   ;;  %s1590_s2 = inlined_call_operand.vmem [shape: f32[1,32], index: 2, kind: input, shape index: {}]   ;;  %s1591_s3 = inlined_call_operand.vmem [shape: bf16[16,32], index: 3, kind: input, shape index: {}]   ;;  %s1592_s4 = inlined_call_operand.vmem [shape: f32[1,32], index: 4, kind: input, shape index: {}]   ;;  %s1593_s5 = inlined_call_operand.hbm [shape: bf16[256,128], index: 5, kind: output, shape index: {}]  }
   0x1   :  { %12 = vsyncpa [#allocation3 + $0x1], 0  ;;  %s1233_s18 = smov 0   ;;  %s1235_s19 = smov 0  }
   0x2   :  { %s1237_s20 = smov 0   ;;  %s1239_s21 = smov 0  }
   0x3 LB: > { %s1254_s22 = sadd.s32 4294967295, %s1196_s21   ;;  %s867_s23 = sadd.s32 4294967294, %s1196_s21   ;;  %s1196_s21 = sphi %s1239_s21, %s1599_s21   ;;  %s1192_s20 = sphi %s1237_s20, %s1598_s20   ;;  %s1188_s19 = sphi %s1235_s19, %s1597_s19   ;;  %s1184_s18 = sphi %s1233_s18, %s1596_s18  }
   0x4   : > { %s1258_s24 = sadd.s32 1, %s1196_s21   ;;  %s135_s25 = sadd.s32 1, %s1192_s20 }
   0x5   : > { %s132_s26 = ssub.s32 %s1196_s21, %s1258_s24  ;;  %p145_p0 = scmp.ne.s32.totalorder %s1192_s20, %s1188_s19 }
   0x6   : > { %p133_p1 = scmp.eq.s32.totalorder %s132_s26, 0  ;;  %p146_p2 = scmp.eq.s32.totalorder %s1254_s22, 1 }
   0x7   : > { %p151_p3 = scmp.ne.s32.totalorder %s1188_s19, %s1184_s18  ;;  %p152_p4 = scmp.eq.s32.totalorder %s867_s23, 1 }
   0x8   : > { %s1269_s27 = scalar_select %p133_p1, %s1192_s20, %s135_s25  }
   0x9   : > { %p1271_p5 = por %p146_p2, %p145_p0  ;;  %p1275_p6 = por %p152_p4, %p151_p3 }
   0xa   : > { %p870_p7 = scmp.ge.s32.totalorder %s1196_s21, 1  ;;  %p191_p8 = scmp.lt.s32.totalorder %s1196_s21, 3 }
   0xc   : > { %p192_p9 = pnand %p870_p7, %p191_p8 }
   0xd   : > { %v1132_v0 = vld [vmem:[%s1591_s3] sm:$0xff] (!%p192_p9)   ;;  %s872_s7 = sshll.u32 (!%p192_p9), %s1254_s22, 4  ;;  %vm266_vm0 = vcmask (!%p192_p9), 130048   ;;  %s1198_s16 = smov (!%p192_p9), 32   ;;  %vm660_vm5 = vcmask (!%p192_p9), 261120   ;;  %vm677_vm6 = vcmask (!%p192_p9), 523264  }
   0xe   : > { %195 = sbr.rel (%p192_p9) target bundleno = 408 (0x198), region = 40  ;;  %p220_p10 = scmp.lt.s32.totalorder (!%p192_p9), %s872_s7, 31  ;;  %1031 = vmatprep.subr.bf16.mxu1 (!%p192_p9), %v1132_v0  ;;  %v1133_v1 = vld [vmem:[%s1589_s1] sm:$0xff] (!%p192_p9)   ;;  %vm694_vm7 = vcmask (!%p192_p9), 531456  }
   0xf   : > { %1032 = vmatpush3.bf16.msra.mxu1 (!%p192_p9), %v1132_v0  ;;  %1013 = vmatprep.subr.bf16.mxu0 (!%p192_p9), %v1133_v1  ;;  %v884_v43 = vld [vmem:[%s1592_s4] ss:$0 sm:$0xff] (!%p192_p9)  ;;  %s216_s25 = sand.u32 (!%p192_p9), 1, %s1188_s19   ;;  %s947_s6 = sshll.u32 (!%p192_p9), %s1254_s22, 10 }
  0x10   : > { %1014 = vmatpush3.bf16.msra.mxu0 (!%p192_p9), %v1133_v1  ;;  %s871_s26 = sshll.u32 (!%p192_p9), %s216_s25, 6  ;;  %s1539_s9 = scalar_lea.hbm (!%p192_p9), %s1593_s5, %s947_s6 }
  0x11   : > { %s1442_s30 = scalar_lea.vmem (!%p192_p9), [#allocation2], %s871_s26  ;;  %s1200_s12 = smov (!%p192_p9), [#allocation2]  }
  0x15   : > { %s1601_s7 = smov (!%p220_p10, %s872_s7), 31 }
  0x16   : > { %s873_s10 = sshll.u32 %s1601_s7, 3  ;;  %s805_s7 = sshll.u32 %s1442_s30, 4  ;;  %s1541_s7 = int_to_ptr.vmem [resolvable:$true] %s805_s7 }
  0x17   : > { %s1291_s13 = scalar_lea.vmem %s1588_s0, %s873_s10  ;;  %s1547_s10 = scalar_lea.sflag [#allocation3], %s216_s25 }
  0x18   : > { %v227_v2 = vld [vmem:[%s1291_s13] sm:$0xff]  ;;  %v228_v3 = vld [vmem:[%s1291_s13 + $0x8] sm:$0xff]  ;;  %v229_v4 = vld [vmem:[%s1291_s13 + $0x10] sm:$0xff]  ;;  %s1134_s11 = scalar_lea.vmem %s1541_s7, 1024 }
  0x19   : > { %v243_v5 = vpack.c.bf16 %v228_v3, %v227_v2  ;;  %v230_v6 = vld [vmem:[%s1291_s13 + $0x18] sm:$0xff]  ;;  %v231_v7 = vld [vmem:[%s1291_s13 + $0x20] sm:$0xff]  ;;  %v232_v8 = vld [vmem:[%s1291_s13 + $0x28] sm:$0xff]  ;;  %v506_v9 = vsel %vm266_vm0, %v229_v4, 0.0  ;;  %v500_v10 = vsel %vm266_vm0, %v227_v2, 0.0  ;;  %v503_v14 = vsel %vm266_vm0, %v228_v3, 0.0  ;;  %p1135_p11 = scmp.ne.s32.totalorder %s1541_s7, %s1134_s11 }
  0x1a   : > { %v244_v11 = vpack.c.bf16 %v230_v6, %v229_v4  ;;  %v245_v12 = vpack.c.bf16 %v232_v8, %v231_v7  ;;  %507 = vadd.xlane.f32.xlu1 %v506_v9  ;;  %501 = vadd.xlane.f32.xlu0 %v500_v10  ;;  %v509_v13 = vsel %vm266_vm0, %v230_v6, 0.0  ;;  %v233_v15 = vld [vmem:[%s1291_s13 + $0x30] sm:$0xff]  ;;  %v234_v16 = vld [vmem:[%s1291_s13 + $0x38] sm:$0xff]  ;;  %v235_v17 = vld [vmem:[%s1291_s13 + $0x40] sm:$0xff]  ;;  %v515_v19 = vsel %vm266_vm0, %v232_v8, 0.0 }
  0x1b   : > { %1033 = vmatprep.mubr.msk.bf16.mxu1 %vm266_vm0, %v243_v5  ;;  %1015 = vmatprep.mubr.msk.bf16.mxu0 %vm266_vm0, %v243_v5  ;;  %v236_v18 = vld [vmem:[%s1291_s13 + $0x48] sm:$0xff]  ;;  %v512_v20 = vsel %vm266_vm0, %v231_v7, 0.0  ;;  %v246_v21 = vpack.c.bf16 %v234_v16, %v233_v15  ;;  %v521_v23 = vsel %vm266_vm0, %v234_v16, 0.0  ;;  %v518_v24 = vsel %vm266_vm0, %v233_v15, 0.0  ;;  %v237_v25 = vld [vmem:[%s1291_s13 + $0x50] sm:$0xff]  ;;  %v238_v26 = vld [vmem:[%s1291_s13 + $0x58] sm:$0xff]  ;;  %p1136_p12 = pnand %p1135_p11, %p1271_p5 }
  0x1c   : > { %1034 = vmatmul.mubr.msk.bf16.vlgmr.msra.gmra.mrb[0].mxu1 %vm266_vm0, %v244_v11  ;;  %1016 = vmatmul.mubr.msk.bf16.vlgmr.msra.gmra.mrb[0].mxu0 %vm266_vm0, %v244_v11  ;;  %v247_v22 = vpack.c.bf16 %v236_v18, %v235_v17  ;;  %v239_v27 = vld [vmem:[%s1291_s13 + $0x60] sm:$0xff]  ;;  %v240_v28 = vld [vmem:[%s1291_s13 + $0x68] sm:$0xff]  ;;  %v527_v29 = vsel %vm266_vm0, %v236_v18, 0.0  ;;  %v524_v30 = vsel %vm266_vm0, %v235_v17, 0.0  ;;  %v248_v31 = vpack.c.bf16 %v238_v26, %v237_v25  ;;  %v241_v35 = vld [vmem:[%s1291_s13 + $0x70] sm:$0xff] }
  0x1d   : > { %1037 = vmatprep.mubr.msk.bf16.mxu1 %vm266_vm0, %v245_v12  ;;  %1019 = vmatprep.mubr.msk.bf16.mxu0 %vm266_vm0, %v245_v12  ;;  %v249_v32 = vpack.c.bf16 %v240_v28, %v239_v27  ;;  %v533_v33 = vsel %vm266_vm0, %v238_v26, 0.0  ;;  %v530_v34 = vsel %vm266_vm0, %v237_v25, 0.0  ;;  %v242_v36 = vld [vmem:[%s1291_s13 + $0x78] sm:$0xff]  ;;  %v539_v37 = vsel %vm266_vm0, %v240_v28, 0.0  ;;  %p1137_p13 = pneg %p1136_p12  ;;  %s1138_s13 = sshll.u32 %s1200_s12, 4  ;;  %s1139_s13 = int_to_ptr.vmem [resolvable:$false] %s1138_s13 }
  0x1e   : > { %510 = vadd.xlane.f32.xlu1 %v509_v13  ;;  %504 = vadd.xlane.f32.xlu0 %v503_v14  ;;  %v536_v38 = vsel %vm266_vm0, %v239_v27, 0.0  ;;  %v250_v39 = vpack.c.bf16 %v242_v36, %v241_v35  ;;  %v545_v40 = vsel %vm266_vm0, %v242_v36, 0.0  ;;  %v542_v41 = vsel %vm266_vm0, %v241_v35, 0.0  ;;  %s1140_s14 = scalar_lea.vmem %s1139_s13, 2048  ;;  %p1141_p0 = scmp.lt.s32.totalorder %s1541_s7, %s1139_s13 }
  0x1f   : > { %p1142_p1 = scmp.lt.s32.totalorder %s1140_s14, %s1134_s11 }
  0x21   : > { %p1143_p2 = por %p1142_p1, %p1141_p0 }
  0x22   : > { %516 = vadd.xlane.f32.xlu1 %v515_v19  ;;  %513 = vadd.xlane.f32.xlu0 %v512_v20 }
  0x23   : > { %p1144_p3 = pnand %p1143_p2, %p1137_p13 }
  0x24   : > { %1038 = vmatmul.mubr.msk.bf16.gmra.mrb[4].mxu1 %vm266_vm0, %v246_v21  ;;  %1020 = vmatmul.mubr.msk.bf16.gmra.mrb[4].mxu0 %vm266_vm0, %v246_v21 }
  0x25   : > { %1041 = vmatprep.mubr.msk.bf16.mxu1 %vm266_vm0, %v247_v22  ;;  %1023 = vmatprep.mubr.msk.bf16.mxu0 %vm266_vm0, %v247_v22 }
  0x26   : > { %522 = vadd.xlane.f32.xlu1 %v521_v23  ;;  %519 = vadd.xlane.f32.xlu0 %v518_v24 }
  0x2a   : > { %528 = vadd.xlane.f32.xlu1 %v527_v29  ;;  %525 = vadd.xlane.f32.xlu0 %v524_v30 }
  0x2c   : > { %1042 = vmatmul.mubr.msk.bf16.gmra.mrb[8].mxu1 %vm266_vm0, %v248_v31  ;;  %1024 = vmatmul.mubr.msk.bf16.gmra.mrb[8].mxu0 %vm266_vm0, %v248_v31 }
  0x2d   : > { %1045 = vmatprep.mubr.msk.bf16.mxu1 %vm266_vm0, %v249_v32  ;;  %1027 = vmatprep.mubr.msk.bf16.mxu0 %vm266_vm0, %v249_v32 }
  0x2e   : > { %534 = vadd.xlane.f32.xlu1 %v533_v33  ;;  %531 = vadd.xlane.f32.xlu0 %v530_v34 }
  0x32   : > { %540 = vadd.xlane.f32.xlu1 %v539_v37  ;;  %537 = vadd.xlane.f32.xlu0 %v536_v38 }
  0x34   : > { %1046 = vmatmul.mubr.msk.bf16.gmra.mrb[12].mxu1 %vm266_vm0, %v250_v39  ;;  %1028 = vmatmul.mubr.msk.bf16.gmra.mrb[12].mxu0 %vm266_vm0, %v250_v39 }
  0x36   : > { %546 = vadd.xlane.f32.xlu1 %v545_v40  ;;  %543 = vadd.xlane.f32.xlu0 %v542_v41 }
  0xa7   : > { %v508_v35 = vpop.xlane.xlu1 %507  ;;  %v502_v36 = vpop.xlane.xlu0 %501 }
  0xa8   : > { %vm550_vm1 = vcmp.ne.f32.partialorder %v508_v35, 0.0  ;;  %vm548_vm2 = vcmp.ne.f32.partialorder %v502_v36, 0.0 }
  0xab   : > { %v511_v37 = vpop.xlane.xlu1 %510  ;;  %v505_v38 = vpop.xlane.xlu0 %504 }
  0xac   : > { %vm551_vm3 = vcmp.ne.f32.partialorder %v511_v37, 0.0  ;;  %vm549_vm4 = vcmp.ne.f32.partialorder %v505_v38, 0.0 }
  0xaf   : > { %v517_v39 = vpop.xlane.xlu1 %516  ;;  %v514_v40 = vpop.xlane.xlu0 %513 }
  0xb0   : > { %vm553_vm8 = vcmp.ne.f32.partialorder %v517_v39, 0.0  ;;  %vm552_vm9 = vcmp.ne.f32.partialorder %v514_v40, 0.0 }
  0xb3   : > { %v1384_v41 = vpop.xlane.xlu1 %522 }
  0xb4   : > { %vm555_vm10 = vcmp.ne.f32.partialorder %v1384_v41, 0.0 }
  0xef   : > { %v1035_v42 = vpop.f32.mrb[0].mxu1  ;;  %v1344_v44 = vpop.f32.mrb[0].mxu0 }
  0xf0   : > { %v437_v45 = vpop.f32.mrb[1].mxu1  ;;  %v1346_v46 = vpop.f32.mrb[1].mxu0  ;;  %v446_v49 = vadd.f32 %v1035_v42, %v884_v43 }
  0xf1   : > { %v1036_v47 = vpop.f32.mrb[2].mxu1  ;;  %v1348_v48 = vpop.f32.mrb[2].mxu0  ;;  %v438_v53 = vadd.f32 %v884_v43, %v437_v45 }
  0xf2   : > { %v449_v50 = vadd.f32 %v1036_v47, %v884_v43  ;;  %v440_v51 = vpop.f32.mrb[3].mxu1  ;;  %v1350_v52 = vpop.f32.mrb[3].mxu0 }
  0xf3   : > { %v441_v54 = vadd.f32 %v884_v43, %v440_v51  ;;  %v1386_v42 = vpop.xlane.xlu0 %519  ;;  %v1388_v45 = vpop.xlane.xlu1 %528 }
  0xf4   : > { %v1092_v55 = vpack.i.bf16 %v449_v50, %v446_v49  ;;  %vm554_vm11 = vcmp.ne.f32.partialorder %v1386_v42, 0.0  ;;  %vm557_vm12 = vcmp.ne.f32.partialorder %v1388_v45, 0.0 }
  0xf5   : > { %v1097_v56 = vpack.i.bf16 %v441_v54, %v438_v53 }
  0xf6   : > { %1093 = vrot.lane.b32.xlu1 %v1092_v55, %s1198_s16  ;;  %v1407_v55 = vld [vmem:[%s1590_s2] ss:$0 sm:$0xff] }
  0xf7   : > { %v1039_v57 = vpop.f32.mrb[4].mxu1  ;;  %1098 = vrot.lane.b32.xlu0 %v1097_v56, %s1198_s16  ;;  %v1354_v58 = vpop.f32.mrb[4].mxu0  ;;  %v1199_v56 = vmov 0.0  }
  0xf8   : > { %v453_v59 = vpop.f32.mrb[5].mxu1  ;;  %v1356_v60 = vpop.f32.mrb[5].mxu0  ;;  %v462_v63 = vadd.f32 %v1039_v57, %v884_v43  ;;  %v896_v57 = vsel %vm550_vm1, 1.0, %v1199_v56  ;;  %v901_v36 = vsel %vm555_vm10, 1.0, %v1199_v56  ;;  %v900_v37 = vsel %vm554_vm11, 1.0, %v1199_v56 }
  0xf9   : > { %v1040_v61 = vpop.f32.mrb[6].mxu1  ;;  %v1358_v62 = vpop.f32.mrb[6].mxu0  ;;  %v454_v3 = vadd.f32 %v884_v43, %v453_v59  ;;  %v894_v59 = vsel %vm548_vm2, 1.0, %v1199_v56 }
  0xfa   : > { %v465_v0 = vadd.f32 %v1040_v61, %v884_v43  ;;  %v456_v1 = vpop.f32.mrb[7].mxu1  ;;  %v1360_v2 = vpop.f32.mrb[7].mxu0  ;;  %v897_v61 = vsel %vm551_vm3, 1.0, %v1199_v56 }
  0xfb   : > { %v457_v4 = vadd.f32 %v884_v43, %v456_v1  ;;  %v1392_v47 = vpop.xlane.xlu1 %534  ;;  %v334_v1 = vadd.f32 %v1344_v44, %v1407_v55  ;;  %v345_v39 = vadd.f32 %v1407_v55, %v1360_v2 }
  0xfc   : > { %v1102_v5 = vpack.i.bf16 %v465_v0, %v462_v63  ;;  %v895_v63 = vsel %vm549_vm4, 1.0, %v1199_v56  ;;  %vm559_vm14 = vcmp.ne.f32.partialorder %v1392_v47, 0.0 }
  0xfd   : > { %v1107_v6 = vpack.i.bf16 %v457_v4, %v454_v3  ;;  %v337_v3 = vadd.f32 %v1348_v48, %v1407_v55 }
  0xfe   : > { %1103 = vrot.lane.b32.xlu1 %v1102_v5, %s1198_s16 }
  0xff   : > { %v1043_v7 = vpop.f32.mrb[8].mxu1  ;;  %v1363_v8 = vpop.f32.mrb[8].mxu0 }
 0x100   : > { %v469_v9 = vpop.f32.mrb[9].mxu1  ;;  %v1365_v10 = vpop.f32.mrb[9].mxu0  ;;  %v478_v13 = vadd.f32 %v1043_v7, %v884_v43  ;;  %v326_v7 = vadd.f32 %v1407_v55, %v1346_v46 }
 0x101   : > { %v1044_v11 = vpop.f32.mrb[10].mxu1  ;;  %v1367_v12 = vpop.f32.mrb[10].mxu0  ;;  %v470_v17 = vadd.f32 %v884_v43, %v469_v9  ;;  %v329_v9 = vadd.f32 %v1407_v55, %v1350_v52 }
 0x102   : > { %v481_v14 = vadd.f32 %v1044_v11, %v884_v43  ;;  %v472_v15 = vpop.f32.mrb[11].mxu1  ;;  %1108 = vrot.lane.b32.xlu1 %v1107_v6, %s1198_s16  ;;  %v1370_v16 = vpop.f32.mrb[11].mxu0 }
 0x103   : > { %v473_v18 = vadd.f32 %v884_v43, %v472_v15  ;;  %v1396_v50 = vpop.xlane.xlu1 %540 }
 0x104   : > { %v1112_v19 = vpack.i.bf16 %v481_v14, %v478_v13  ;;  %vm561_vm0 = vcmp.ne.f32.partialorder %v1396_v50, 0.0 }
 0x105   : > { %v1117_v20 = vpack.i.bf16 %v473_v18, %v470_v17 }
 0x106   : > { %1113 = vrot.lane.b32.xlu1 %v1112_v19, %s1198_s16 }
 0x107   : > { %v1047_v21 = vpop.f32.mrb[12].mxu1  ;;  %1118 = vrot.lane.b32.xlu0 %v1117_v20, %s1198_s16  ;;  %v1374_v22 = vpop.f32.mrb[12].mxu0 }
 0x108   : > { %v485_v23 = vpop.f32.mrb[13].mxu1  ;;  %v1376_v24 = vpop.f32.mrb[13].mxu0  ;;  %v494_v27 = vadd.f32 %v1047_v21, %v884_v43 }
 0x109   : > { %v1048_v25 = vpop.f32.mrb[14].mxu1  ;;  %v1378_v26 = vpop.f32.mrb[14].mxu0  ;;  %v486_v31 = vadd.f32 %v884_v43, %v485_v23 }
 0x10a   : > { %v497_v28 = vadd.f32 %v1048_v25, %v884_v43  ;;  %v488_v29 = vpop.f32.mrb[15].mxu1  ;;  %v1380_v30 = vpop.f32.mrb[15].mxu0  ;;  %v385_v50 = vadd.f32 %v1378_v26, %v1407_v55 }
 0x10b   : > { %v489_v32 = vadd.f32 %v884_v43, %v488_v29  ;;  %v1390_v43 = vpop.xlane.xlu0 %525  ;;  %v1400_v53 = vpop.xlane.xlu1 %546  ;;  %v898_v29 = vsel %vm552_vm9, 1.0, %v1199_v56 }
 0x10c   : > { %v1127_v33 = vpack.i.bf16 %v497_v28, %v494_v27  ;;  %v899_v28 = vsel %vm553_vm8, 1.0, %v1199_v56  ;;  %vm556_vm13 = vcmp.ne.f32.partialorder %v1390_v43, 0.0  ;;  %vm563_vm2 = vcmp.ne.f32.partialorder %v1400_v53, 0.0 }
 0x10d   : > { %v1122_v34 = vpack.i.bf16 %v489_v32, %v486_v31  ;;  %v350_v32 = vadd.f32 %v1354_v58, %v1407_v55  ;;  %v377_v53 = vadd.f32 %v1407_v55, %v1380_v30 }
 0x10e   : > { %1128 = vrot.lane.b32.xlu1 %v1127_v33, %s1198_s16  ;;  %v353_v33 = vadd.f32 %v1358_v62, %v1407_v55  ;;  %v342_v62 = vadd.f32 %v1407_v55, %v1356_v60  ;;  %v905_v60 = vsel %vm559_vm14, 1.0, %v1199_v56 }
 0x10f   : > { %1123 = vrot.lane.b32.xlu0 %v1122_v34, %s1198_s16  ;;  %v1394_v49 = vpop.xlane.xlu0 %531 }
 0x110   : > { %vm558_vm15 = vcmp.ne.f32.partialorder %v1394_v49, 0.0  ;;  %v369_v49 = vadd.f32 %v1367_v12, %v1407_v55 }
 0x111   : > { %v904_v2 = vsel %vm558_vm15, 1.0, %v1199_v56 }
 0x113   : > { %v1398_v51 = vpop.xlane.xlu0 %537 }
 0x114   : > { %vm560_vm1 = vcmp.ne.f32.partialorder %v1398_v51, 0.0  ;;  %v374_v51 = vadd.f32 %v1407_v55, %v1376_v24 }
 0x117   : > { %v1402_v54 = vpop.xlane.xlu0 %543 }
 0x118   : > { %vm562_vm3 = vcmp.ne.f32.partialorder %v1402_v54, 0.0 }
 0x168   : > { %v1094_v0 = vpop.permute.xlu1 %1093 }
 0x169   : > { %v1096_v4 = vunpack.i.h.bf16 %v1094_v0  ;;  %v1095_v5 = vunpack.i.l.bf16 %v1094_v0  ;;  %v1099_v6 = vpop.permute.xlu0 %1098  ;;  %v366_v0 = vadd.f32 %v1363_v8, %v1407_v55 }
 0x16a   : > { %v1101_v11 = vunpack.i.h.bf16 %v1099_v6  ;;  %v1100_v13 = vunpack.i.l.bf16 %v1099_v6  ;;  %v358_v6 = vadd.f32 %v1407_v55, %v1365_v10 }
 0x16b   : > { %v663_v44 = vsel %vm660_vm5, %v334_v1, %v1095_v5  ;;  %v664_v14 = vsel %vm660_vm5, %v337_v3, %v1096_v4 }
 0x16c   : > { %v680_v48 = vsel %vm677_vm6, %v663_v44, %v896_v57  ;;  %v681_v15 = vsel %vm677_vm6, %v664_v14, %v897_v61  ;;  %v661_v17 = vsel %vm660_vm5, %v326_v7, %v1100_v13  ;;  %v662_v46 = vsel %vm660_vm5, %v329_v9, %v1101_v11 }
 0x16d   : > { %v697_v52 = vsel %vm694_vm7, %v680_v48, 0.0  ;;  %v698_v18 = vsel %vm694_vm7, %v681_v15, 0.0  ;;  %v678_v19 = vsel %vm677_vm6, %v661_v17, %v894_v59  ;;  %v679_v20 = vsel %vm677_vm6, %v662_v46, %v895_v63 }
 0x16e   : > { %v956_v21 = vpack.c.bf16 %v698_v18, %v697_v52  ;;  %v695_v23 = vsel %vm694_vm7, %v678_v19, 0.0  ;;  %v696_v25 = vsel %vm694_vm7, %v679_v20, 0.0  ;;  %v903_v59 = vsel %vm557_vm12, 1.0, %v1199_v56 }
 0x16f   : > { %v951_v27 = vpack.c.bf16 %v696_v25, %v695_v23  ;;  %v902_v61 = vsel %vm556_vm13, 1.0, %v1199_v56  ;;  %v361_v48 = vadd.f32 %v1407_v55, %v1370_v16 }
 0x170   : > { %988 = vst [vmem:[%s1442_s30 + $0x8] sm:$0xff] %v956_v21   ;;  %v1104_v31 = vpop.permute.xlu1 %1103 }
 0x171   : > { %952 = vst [vmem:[%s1442_s30] sm:$0xff] %v951_v27   ;;  %v1106_v34 = vunpack.i.h.bf16 %v1104_v31  ;;  %v1105_v35 = vunpack.i.l.bf16 %v1104_v31  ;;  %v907_v31 = vsel %vm561_vm0, 1.0, %v1199_v56 }
 0x173   : > { %v667_v38 = vsel %vm660_vm5, %v350_v32, %v1105_v35  ;;  %v668_v58 = vsel %vm660_vm5, %v353_v33, %v1106_v34  ;;  %v906_v32 = vsel %vm560_vm1, 1.0, %v1199_v56  ;;  %v382_v34 = vadd.f32 %v1374_v22, %v1407_v55 }
 0x174   : > { %v684_v40 = vsel %vm677_vm6, %v667_v38, %v900_v37  ;;  %v685_v41 = vsel %vm677_vm6, %v668_v58, %v901_v36  ;;  %v1109_v42 = vpop.permute.xlu1 %1108  ;;  %v909_v58 = vsel %vm563_vm2, 1.0, %v1199_v56 }
 0x175   : > { %v701_v45 = vsel %vm694_vm7, %v684_v40, 0.0  ;;  %v702_v43 = vsel %vm694_vm7, %v685_v41, 0.0  ;;  %v1111_v47 = vunpack.i.h.bf16 %v1109_v42  ;;  %v1110_v57 = vunpack.i.l.bf16 %v1109_v42 }
 0x176   : > { %v966_v63 = vpack.c.bf16 %v702_v43, %v701_v45 }
 0x177   : > { %v665_v1 = vsel %vm660_vm5, %v342_v62, %v1110_v57  ;;  %v666_v3 = vsel %vm660_vm5, %v345_v39, %v1111_v47  ;;  %v908_v62 = vsel %vm562_vm3, 1.0, %v1199_v56 }
 0x178   : > { %990 = vst [vmem:[%s1442_s30 + $0x18] sm:$0xff] %v966_v63   ;;  %v682_v4 = vsel %vm677_vm6, %v665_v1, %v898_v29  ;;  %v683_v5 = vsel %vm677_vm6, %v666_v3, %v899_v28  ;;  %v1114_v7 = vpop.permute.xlu1 %1113 }
 0x179   : > { %v699_v9 = vsel %vm694_vm7, %v682_v4, 0.0  ;;  %v700_v8 = vsel %vm694_vm7, %v683_v5, 0.0  ;;  %v1116_v11 = vunpack.i.h.bf16 %v1114_v7  ;;  %v1115_v13 = vunpack.i.l.bf16 %v1114_v7  ;;  %v1119_v44 = vpop.permute.xlu0 %1118 }
 0x17a   : > { %v961_v14 = vpack.c.bf16 %v700_v8, %v699_v9  ;;  %v1121_v15 = vunpack.i.h.bf16 %v1119_v44  ;;  %v1120_v17 = vunpack.i.l.bf16 %v1119_v44 }
 0x17b   : > { %v671_v10 = vsel %vm660_vm5, %v366_v0, %v1115_v13  ;;  %v672_v12 = vsel %vm660_vm5, %v369_v49, %v1116_v11 }
 0x17c   : > { %989 = vst [vmem:[%s1442_s30 + $0x10] sm:$0xff] %v961_v14   ;;  %v688_v46 = vsel %vm677_vm6, %v671_v10, %v904_v2  ;;  %v689_v52 = vsel %vm677_vm6, %v672_v12, %v905_v60  ;;  %v669_v18 = vsel %vm660_vm5, %v358_v6, %v1120_v17  ;;  %v670_v16 = vsel %vm660_vm5, %v361_v48, %v1121_v15 }
 0x17d   : > { %v705_v19 = vsel %vm694_vm7, %v688_v46, 0.0  ;;  %v706_v20 = vsel %vm694_vm7, %v689_v52, 0.0  ;;  %v686_v21 = vsel %vm677_vm6, %v669_v18, %v902_v61  ;;  %v687_v23 = vsel %vm677_vm6, %v670_v16, %v903_v59 }
 0x17e   : > { %v976_v25 = vpack.c.bf16 %v706_v20, %v705_v19  ;;  %v703_v27 = vsel %vm694_vm7, %v686_v21, 0.0  ;;  %v704_v28 = vsel %vm694_vm7, %v687_v23, 0.0 }
 0x17f   : > { %v971_v29 = vpack.c.bf16 %v704_v28, %v703_v27 }
 0x180   : > { %992 = vst [vmem:[%s1442_s30 + $0x28] sm:$0xff] %v976_v25   ;;  %v1129_v33 = vpop.permute.xlu1 %1128 }
 0x181   : > { %991 = vst [vmem:[%s1442_s30 + $0x20] sm:$0xff] %v971_v29   ;;  %v1131_v35 = vunpack.i.h.bf16 %v1129_v33  ;;  %v1130_v36 = vunpack.i.l.bf16 %v1129_v33  ;;  %v1124_v37 = vpop.permute.xlu0 %1123 }
 0x182   : > { %v1126_v54 = vunpack.i.h.bf16 %v1124_v37  ;;  %v1125_v38 = vunpack.i.l.bf16 %v1124_v37 }
 0x183   : > { %v675_v22 = vsel %vm660_vm5, %v382_v34, %v1130_v36  ;;  %v676_v39 = vsel %vm660_vm5, %v385_v50, %v1131_v35 }
 0x184   : > { %v692_v26 = vsel %vm677_vm6, %v675_v22, %v908_v62  ;;  %v693_v24 = vsel %vm677_vm6, %v676_v39, %v909_v58  ;;  %v673_v30 = vsel %vm660_vm5, %v374_v51, %v1125_v38  ;;  %v674_v55 = vsel %vm660_vm5, %v377_v53, %v1126_v54 }
 0x185   : > { %v709_v56 = vsel %vm694_vm7, %v692_v26, 0.0  ;;  %v710_v40 = vsel %vm694_vm7, %v693_v24, 0.0  ;;  %v690_v41 = vsel %vm677_vm6, %v673_v30, %v906_v32  ;;  %v691_v42 = vsel %vm677_vm6, %v674_v55, %v907_v31 }
 0x186   : > { %v986_v45 = vpack.c.bf16 %v710_v40, %v709_v56  ;;  %v707_v43 = vsel %vm694_vm7, %v690_v41, 0.0  ;;  %v708_v47 = vsel %vm694_vm7, %v691_v42, 0.0 }
 0x187   : > { %v981_v57 = vpack.c.bf16 %v708_v47, %v707_v43 }
 0x188   : > { %994 = vst [vmem:[%s1442_s30 + $0x38] sm:$0xff] %v986_v45  }
 0x189   : > { %993 = vst [vmem:[%s1442_s30 + $0x30] sm:$0xff] %v981_v57  }
 0x18a   : > { %1147 = shalt.err (!%p1144_p3)
}
 0x18b   : > { %s1148_s15 = scalar_lea.hbm %s1539_s9, 1024  ;;  %s1152_s23 = scalar_lea.hbm %s1593_s5, 2048 }
 0x18c   : > { %p1149_p4 = scmp.ne.s32.totalorder %s1539_s9, %s1148_s15  ;;  %p1153_p9 = scmp.lt.u32.totalorder %s1539_s9, %s1593_s5 }
 0x18d   : > { %p1154_p10 = scmp.lt.u32.totalorder %s1152_s23, %s1148_s15  ;;  %p1156_p12 = scmp.lt.u32.totalorder %s1148_s15, %s1539_s9 }
 0x18e   : > { %p1150_p7 = pnand %p1149_p4, %p1271_p5 }
 0x18f   : > { %p1155_p11 = por %p1154_p10, %p1153_p9 }
 0x190   : > { %p1151_p8 = pneg %p1150_p7 }
 0x191   : > { %p1157_p13 = por %p1156_p12, %p1155_p11 }
 0x193   : > { %p1158_p0 = pnand %p1157_p13, %p1151_p8 }
 0x195   : > { %1161 = shalt.err (!%p1158_p0)
}
 0x196   : > { %s1201_s30 = smov 64   ;;  %s1202_s6 = smov 4  }
 0x197   : > { %1049 = dma.vmem_to_hbm [thread:$0]  (%p1271_p5), %s1541_s7, 1024, %s1539_s9, %s1547_s10, %s1201_s30, %s1201_s30, %s1202_s6  }
 0x198 PF: > { %p1055_p1 = scmp.ge.s32.totalorder %s1196_s21, 2  ;;  %s820_s22 = sand.u32 1, %s1184_s18  }
 0x199   : > { %s821_s8 = scalar_lea.sflag [#allocation3], %s820_s22 }
 0x19a   : > { %p1052_p2 = pnand %p1055_p1, %p1275_p6 }
 0x19c   : > { %1179 = dma.done.wait (!%p1052_p2), %s821_s8, 1024  }
 0x19d   : > { %1181 = vsyncadd (!%p1052_p2), %s821_s8, 4294966272  ;;  %p15_p3 = scmp.ge.s32.totalorder %s1258_s24, 4   ;;  %s1596_s18 = smov %s1188_s19 }
 0x19e   : > { %s1597_s19 = smov %s1192_s20  ;;  %s1598_s20 = smov %s1269_s27 }
 0x19f   : > { %s1599_s21 = smov %s1258_s24  ;;  %17 = sbr.rel (!%p15_p3) target bundleno = 3 (0x3), region = 75 }
 0x1a6   :  { %826 = vsyncpa [#allocation3], 1 }
 0x1a7   :  { %828 = vsyncpa [#allocation3 + $0x1], 1 }

</bundles_post_ra>
